<compile_context>
chip_gen: v6e
topology: v6e:2x2x1
jax: 0.10.0
libtpu: 0.0.40
codegen_flags: <defaults>
</compile_context>

<pallas_src>
import math

import numpy as np
import jax
import jax.numpy as jnp
from jax.experimental import pallas as pl
from jax.experimental.pallas import tpu as pltpu


def _round_up(x, m):
    return ((x + m - 1) // m) * m


def _round_down(x, m):
    return (x // m) * m


def _upsample_kernel(x_ref, r_ref, o_ref):
    # x_ref: (tm, g*w); r_ref: (g*w, g*s*s*w) static 0/1 replication matrix
    # (DMA'd once, resident across grid steps); o_ref: (tm, g*s*s*w).
    # One MXU matmul does both the lane (W) repeat and the sublane (H) repeat.
    # Exact in the native dtype: each output element is one input element * 1.0.
    o_ref[...] = jnp.dot(x_ref[...], r_ref[...],
                         preferred_element_type=o_ref.dtype)


def _vmem_capacity_bytes():
    try:
        info = pltpu.get_tpu_info()
        for name in ("vmem_capacity_bytes", "vmem_size_bytes", "vmem_bytes"):
            v = getattr(info, name, None)
            if v:
                return int(v)
    except Exception:
        pass
    return 64 * 1024 * 1024  # conservative default (v7x per-TC VMEM)


def _replication_matrix(w, s, g):
    # rmat[m, q] = 1 iff flattened group-input element m feeds group-output q.
    wo = s * w
    n_out = g * s * wo
    q = np.arange(n_out)
    src = (q // (s * wo)) * w + (q % wo) // s          # source index per output
    m = np.arange(g * w)
    return m[:, None] == src[None, :]                  # bool (g*w, n_out)


def maml_upsample(x, scale_factor=2, mode="nearest"):
    """Equivalent of MamlUpsample(scale_factor, mode='nearest').forward(x).

    x: (b, n, c, h, w)  ->  (b, n, c, h*scale, w*scale)
    """
    assert x.ndim == 5, (
        f"Expected shape [batch, inner_batch, channels, height, width], got {x.shape}"
    )
    assert mode == "nearest"  # TODO(synk): bilinear / other interpolation modes.
    s = int(round(float(scale_factor)))
    assert s >= 1 and float(scale_factor) == float(s), (
        "only positive integer scale factors are supported"
    )  # TODO(synk): non-integer nearest scales (torch floor-size semantics).
    # TODO(synk): copy-based (MXU-free) path for integer dtypes (f32 accumulate
    # corrupts ints > 2^24 and v7x's MXU has no integer mode).
    assert jnp.issubdtype(x.dtype, jnp.floating), "only floating dtypes supported"

    if s == 1:
        return x

    b, n, c, h, w = x.shape
    ho, wo = h * s, w * s
    r_total = b * n * c * h            # one "row" per (b, n, c, h)
    n_per_row = s * s * w              # output elements produced per input row
    itemsize = x.dtype.itemsize

    # ---- Row grouping: make the stored output last dim a multiple of 128. ----
    # Grouping ANY g consecutive rows is valid (each row's s*wo output chunk is
    # contiguous in the flattened output); only requirement is g | r_total.
    g = 128 // math.gcd(n_per_row, 128)
    if g * w > 256 or r_total % g != 0:
        g = 1                          # fallback: correct, possibly lane-sparse stores
    else:
        # Optionally fold extra groups until the *input* last dim is lane-dense
        # too; bounded so the one-hot matmul stays memory-bound (v5e f32 MXU).
        max_gw = 64 if itemsize >= 4 else 128
        while g * 2 * w <= max_gw and r_total % (g * 2) == 0:
            g *= 2
    r_groups = r_total // g
    n_in = g * w
    n_out = g * n_per_row

    # Free (contiguity-preserving) reshape: block rows of length g*w.
    x2d = x.reshape(r_groups, n_in)

    # Static 0/1 replication matrix, built once on the host; DMA'd to VMEM once
    # (constant index_map) and resident across all grid steps.
    rmat = jnp.asarray(_replication_matrix(w, s, g), dtype=x.dtype)
    rmat_bytes = n_in * n_out * itemsize

    # ---- Generation-aware tiling. ----
    vmem_cap = _vmem_capacity_bytes()
    if vmem_cap <= 80 * 1024 * 1024:           # v7x-class: 64 MiB VMEM per TC
        out_tile_target = 4 * 1024 * 1024
        vmem_limit = min(vmem_cap, 48 * 1024 * 1024)
    else:                                      # v5e / v6e: 128 MiB VMEM
        out_tile_target = 12 * 1024 * 1024
        vmem_limit = min(vmem_cap, 96 * 1024 * 1024)

    sub = max(8, 32 // itemsize)               # packed sublane tile: 8 f32 / 16 bf16
    bytes_per_row_out = max(1, n_out * itemsize)
    tm_cap = max(sub, _round_down(out_tile_target // bytes_per_row_out, sub))
    tm_floor = max(sub, _round_down((512 * 1024) // bytes_per_row_out, sub))
    tm_steps = max(sub, _round_up(pl.cdiv(r_groups, 8), sub))  # aim for >= 8 steps
    tm = min(tm_cap, max(tm_steps, tm_floor))
    # Rare safety valve: shrink if double-buffered footprint would not fit.
    while tm > sub and (2 * tm * (n_in + n_out) * itemsize
                        + 2 * rmat_bytes + (1 << 20)) > vmem_limit:
        tm = max(sub, _round_down(tm // 2, sub))
    if tm >= r_groups:
        tm = r_groups                          # single full-extent block (always legal)
    grid = (pl.cdiv(r_groups, tm),)

    cost = pl.CostEstimate(
        flops=2 * r_groups * n_in * n_out,
        transcendentals=0,
        bytes_accessed=(r_groups * (n_in + n_out)) * itemsize + rmat_bytes,
    )

    out2d = pl.pallas_call(
        _upsample_kernel,
        out_shape=jax.ShapeDtypeStruct((r_groups, n_out), x.dtype),
        grid_spec=pltpu.PrefetchScalarGridSpec(
            num_scalar_prefetch=0,
            grid=grid,
            in_specs=[
                pl.BlockSpec((tm, n_in), lambda i: (i, 0)),
                pl.BlockSpec((n_in, n_out), lambda i: (0, 0)),  # resident rmat
            ],
            out_specs=pl.BlockSpec((tm, n_out), lambda i: (i, 0)),
        ),
        compiler_params=pltpu.CompilerParams(
            dimension_semantics=("parallel",),
            vmem_limit_bytes=vmem_limit,
        ),
        cost_estimate=cost,
    )(x2d, rmat)

    # Free reshape back to the 5D output layout.
    return out2d.reshape(b, n, c, ho, wo)


def _reference_upsample(x, scale_factor=2):
    # Pure-JAX reference of nn.Upsample(mode='nearest') on the 5D tensor.
    s = int(scale_factor)
    y = jnp.repeat(x, s, axis=-2)
    y = jnp.repeat(y, s, axis=-1)
    return y


if __name__ == "__main__":
    key = jax.random.PRNGKey(0)

    # Case 1: f32, scale 2 — lane-dense output path (g grows to 4 -> 256 lanes).
    b, n, c, h, w = 2, 3, 4, 16, 16
    scale = 2
    x = jax.random.normal(key, (b, n, c, h, w), dtype=jnp.float32)
    out = jax.block_until_ready(maml_upsample(x, scale_factor=scale))
    ref = _reference_upsample(x, scale_factor=scale)
    assert out.shape == (b, n, c, h * scale, w * scale), out.shape
    assert out.dtype == x.dtype
    assert jnp.array_equal(out, ref), "mismatch vs nearest-upsample reference (f32, s=2)"

    # Case 2: bf16, scale 2 — native-dtype MXU accumulation (no f32 intermediate).
    xb = x.astype(jnp.bfloat16)
    outb = jax.block_until_ready(maml_upsample(xb, scale_factor=scale))
    refb = _reference_upsample(xb, scale_factor=scale)
    assert outb.dtype == jnp.bfloat16
    assert jnp.array_equal(outb, refb), "mismatch vs nearest-upsample reference (bf16, s=2)"

    # Case 3: scale 3, odd geometry — lane-dense path with g=16 (1152-lane rows).
    x3 = jax.random.normal(jax.random.PRNGKey(1), (1, 2, 3, 8, 8), dtype=jnp.float32)
    out3 = jax.block_until_ready(maml_upsample(x3, scale_factor=3))
    ref3 = _reference_upsample(x3, scale_factor=3)
    assert out3.shape == (1, 2, 3, 24, 24), out3.shape
    assert jnp.array_equal(out3, ref3), "mismatch vs nearest-upsample reference (f32, s=3)"

    # Case 4: geometry that forces the g=1 (lane-sparse) fallback path.
    x4 = jax.random.normal(jax.random.PRNGKey(2), (1, 1, 3, 3, 10), dtype=jnp.float32)
    out4 = jax.block_until_ready(maml_upsample(x4, scale_factor=2))
    ref4 = _reference_upsample(x4, scale_factor=2)
    assert out4.shape == (1, 1, 3, 6, 20), out4.shape
    assert jnp.array_equal(out4, ref4), "mismatch vs nearest-upsample reference (f32 fallback)"

    print("KERNEL_OK")
</pallas_src>

<mosaic_0001>
module attributes {stable_mosaic.version = 11 : i64} {
  func.func @_upsample_kernel(%arg0: i32, %arg1: memref<96x64xf32, #tpu.memory_space<vmem>>, %arg2: memref<64x256xf32, #tpu.memory_space<vmem>>, %arg3: memref<96x256xf32, #tpu.memory_space<vmem>>) attributes {dimension_semantics = [#tpu.dimension_semantics<parallel>], iteration_bounds = array<i64: 1>, scalar_prefetch = 0 : i64, scratch_operands = 0 : i64, tpu.core_type = #tpu.core_type<tc>, window_params = [{transform_indices = @transform_0, window_bounds = array<i64: 96, 64>}, {pipeline_mode = #tpu.pipeline_mode<synchronous>, transform_indices = @transform_1, window_bounds = array<i64: 64, 256>}, {transform_indices = @transform_2, window_bounds = array<i64: 96, 256>}]} {
    %c0 = arith.constant 0 : index
    %c0_0 = arith.constant 0 : index
    %0 = vector.load %arg1[%c0, %c0_0] : memref<96x64xf32, #tpu.memory_space<vmem>>, vector<96x64xf32>
    %c0_1 = arith.constant 0 : index
    %c0_2 = arith.constant 0 : index
    %1 = vector.load %arg2[%c0_1, %c0_2] : memref<64x256xf32, #tpu.memory_space<vmem>>, vector<64x256xf32>
    %cst = arith.constant dense<0.000000e+00> : vector<96x256xf32>
    %2 = tpu.matmul %0, %1, %cst {dimension_numbers = #tpu.dot_dimension_numbers<[1], [0], [0], [1], [0, 0, 1, 1], [], []>} : vector<96x64xf32>, vector<64x256xf32>, vector<96x256xf32> -> vector<96x256xf32>
    %c0_3 = arith.constant 0 : index
    %c0_4 = arith.constant 0 : index
    %3 = vector.load %arg3[%c0_3, %c0_4] : memref<96x256xf32, #tpu.memory_space<vmem>>, vector<96x256xf32>
    tpu.vector_store %arg3[%c0_3, %c0_4], %2 {strides = array<i32>} : memref<96x256xf32, #tpu.memory_space<vmem>>, vector<96x256xf32>,
    return
  }
  func.func @transform_0(%arg0: i32) -> (i32, i32) {
    %c0_i32 = arith.constant 0 : i32
    %c0_i32_0 = arith.constant 0 : i32
    return %arg0, %c0_i32 : i32, i32
  }
  func.func @transform_1(%arg0: i32) -> (i32, i32) {
    %c0_i32 = arith.constant 0 : i32
    %c0_i32_0 = arith.constant 0 : i32
    %c0_i32_1 = arith.constant 0 : i32
    return %c0_i32, %c0_i32_0 : i32, i32
  }
  func.func @transform_2(%arg0: i32) -> (i32, i32) {
    %c0_i32 = arith.constant 0 : i32
    %c0_i32_0 = arith.constant 0 : i32
    return %arg0, %c0_i32 : i32, i32
  }
}

</mosaic_0001>

<bundles_post_ra>
// kernel: tpu_custom_call.1
= control target key start
LH: loop header
LB: loop body
LE: loop exit
PB: predicated region body
PF: predicated region fallthrough
CT: control target
= control target key end

     0   :  { %s426_s0 = inlined_call_operand.vmem [shape: f32[96,64], index: 0, kind: input, shape index: {}]   ;;  %s427_s1 = inlined_call_operand.vmem [shape: f32[64,256], index: 1, kind: input, shape index: {}]   ;;  %s428_s2 = inlined_call_operand.hbm [shape: f32[96,256], index: 2, kind: output, shape index: {}]  }
   0x1   :  { %v39_v0 = vld [vmem:[%s427_s1 + $0x78] sm:$0xff]  ;;  %v38_v1 = vld [vmem:[%s427_s1 + $0x70] sm:$0xff]  ;;  %v37_v2 = vld [vmem:[%s427_s1 + $0x68] sm:$0xff] }
   0x2   :  { %93 = vmatprep.subr.mxu0 %v39_v0  ;;  %266 = vmatprep.subr.mxu1 %v39_v0  ;;  %v36_v3 = vld [vmem:[%s427_s1 + $0x60] sm:$0xff]  ;;  %v35_v4 = vld [vmem:[%s427_s1 + $0x58] sm:$0xff]  ;;  %v34_v5 = vld [vmem:[%s427_s1 + $0x50] sm:$0xff] }
   0x3   :  { %94 = vmatpush1.msra.mxu0 %v38_v1  ;;  %274 = vmatpush1.msra.mxu1 %v38_v1  ;;  %v33_v6 = vld [vmem:[%s427_s1 + $0x48] sm:$0xff]  ;;  %v32_v7 = vld [vmem:[%s427_s1 + $0x40] sm:$0xff]  ;;  %v31_v8 = vld [vmem:[%s427_s1 + $0x38] sm:$0xff] }
   0x4   :  { %95 = vmatprep.subr.mxu0 %v37_v2  ;;  %267 = vmatprep.subr.mxu1 %v37_v2  ;;  %v30_v9 = vld [vmem:[%s427_s1 + $0x30] sm:$0xff]  ;;  %v29_v10 = vld [vmem:[%s427_s1 + $0x28] sm:$0xff]  ;;  %v28_v11 = vld [vmem:[%s427_s1 + $0x20] sm:$0xff] }
   0x5   :  { %96 = vmatpush1.msra.mxu0 %v36_v3  ;;  %275 = vmatpush1.msra.mxu1 %v36_v3 }
   0x6   :  { %97 = vmatprep.subr.mxu0 %v35_v4  ;;  %268 = vmatprep.subr.mxu1 %v35_v4 }
   0x7   :  { %98 = vmatpush1.msra.mxu0 %v34_v5  ;;  %276 = vmatpush1.msra.mxu1 %v34_v5 }
   0x8   :  { %99 = vmatprep.subr.mxu0 %v33_v6  ;;  %269 = vmatprep.subr.mxu1 %v33_v6 }
   0x9   :  { %100 = vmatpush1.msra.mxu0 %v32_v7  ;;  %277 = vmatpush1.msra.mxu1 %v32_v7 }
   0xa   :  { %101 = vmatprep.subr.mxu0 %v31_v8  ;;  %270 = vmatprep.subr.mxu1 %v31_v8 }
   0xb   :  { %7 = vsyncpa [#allocation3], 0  ;;  %102 = vmatpush1.msra.mxu0 %v30_v9  ;;  %278 = vmatpush1.msra.mxu1 %v30_v9  ;;  %v27_v12 = vld [vmem:[%s427_s1 + $0x18] sm:$0xff]  ;;  %v26_v13 = vld [vmem:[%s427_s1 + $0x10] sm:$0xff]  ;;  %vm40_vm0 = vcmask 523264   ;;  %v308_v18 = vmov 0.0  }
   0xc   :  { %103 = vmatprep.subr.mxu0 %v29_v10  ;;  %271 = vmatprep.subr.mxu1 %v29_v10  ;;  %v25_v14 = vld [vmem:[%s427_s1 + $0x8] sm:$0xff]  ;;  %v24_v15 = vld [vmem:[%s427_s1] sm:$0xff]  ;;  %v18_v17 = vld [vmem:[%s426_s0 + $0x30] sm:$0xff] }
   0xd   :  { %104 = vmatpush1.msra.mxu0 %v28_v11  ;;  %279 = vmatpush1.msra.mxu1 %v28_v11  ;;  %v12_v16 = vld [vmem:[%s426_s0] sm:$0xff]  ;;  %v13_v19 = vld [vmem:[%s426_s0 + $0x8] sm:$0xff]  ;;  %v19_v20 = vld [vmem:[%s426_s0 + $0x38] sm:$0xff] }
   0xe   :  { %105 = vmatprep.subr.mxu0 %v27_v12  ;;  %272 = vmatprep.subr.mxu1 %v27_v12  ;;  %v14_v21 = vld [vmem:[%s426_s0 + $0x10] sm:$0xff]  ;;  %v20_v22 = vld [vmem:[%s426_s0 + $0x40] sm:$0xff]  ;;  %v15_v23 = vld [vmem:[%s426_s0 + $0x18] sm:$0xff] }
   0xf   :  { %106 = vmatpush1.msra.mxu0 %v26_v13  ;;  %280 = vmatpush1.msra.mxu1 %v26_v13  ;;  %v21_v24 = vld [vmem:[%s426_s0 + $0x48] sm:$0xff]  ;;  %v16_v25 = vld [vmem:[%s426_s0 + $0x20] sm:$0xff]  ;;  %v22_v26 = vld [vmem:[%s426_s0 + $0x50] sm:$0xff] }
  0x10   :  { %107 = vmatprep.subr.mxu0 %v25_v14  ;;  %273 = vmatprep.subr.mxu1 %v25_v14  ;;  %v17_v27 = vld [vmem:[%s426_s0 + $0x28] sm:$0xff]  ;;  %v23_v28 = vld [vmem:[%s426_s0 + $0x58] sm:$0xff]  ;;  %s309_s0 = smov [#allocation2]  }
  0x11   :  { %108 = vmatpush1.msra.mxu0 %v24_v15  ;;  %281 = vmatpush1.msra.mxu1 %v24_v15  ;;  %s243_s8 = sshll.u32 %s309_s0, 4  ;;  %s244_s8 = int_to_ptr.vmem [resolvable:$true] %s243_s8 }
  0x12   :  { %141 = vmatprep.mubr.f32.mxu0 %v308_v18  ;;  %177 = vmatprep.mubr.f32.mxu1 %v308_v18  ;;  %s286_s9 = scalar_lea.vmem %s244_s8, 3072  ;;  %p291_p1 = scmp.lt.s32.totalorder %s244_s8, %s244_s8 }
  0x13   :  { %254 = vmatmul.mubr.msk.f32.vlgmr.msra.gmra.mxu0 %vm40_vm0, %v12_v16  ;;  %260 = vmatmul.mubr.msk.f32.vlgmr.msra.gmra.mxu1 %vm40_vm0, %v18_v17  ;;  %p287_p0 = scmp.ne.s32.totalorder %s244_s8, %s286_s9  ;;  %p292_p2 = scmp.lt.s32.totalorder %s286_s9, %s286_s9 }
  0x14   :  { %147 = vmatprep.mubr.f32.mxu0 %v308_v18  ;;  %183 = vmatprep.mubr.f32.mxu1 %v308_v18 }
  0x15   :  { %p293_p3 = por %p292_p2, %p291_p1 }
  0x17   :  { %255 = vmatmul.mubr.msk.f32.gmra.mxu0 %vm40_vm0, %v13_v19  ;;  %261 = vmatmul.mubr.msk.f32.gmra.mxu1 %vm40_vm0, %v19_v20  ;;  %p294_p4 = pnand %p293_p3, %p287_p0 }
  0x18   :  { %153 = vmatprep.mubr.f32.mxu0 %v308_v18  ;;  %189 = vmatprep.mubr.f32.mxu1 %v308_v18 }
  0x1b   :  { %256 = vmatmul.mubr.msk.f32.gmra.mxu0 %vm40_vm0, %v14_v21  ;;  %262 = vmatmul.mubr.msk.f32.gmra.mxu1 %vm40_vm0, %v20_v22 }
  0x1c   :  { %159 = vmatprep.mubr.f32.mxu0 %v308_v18  ;;  %195 = vmatprep.mubr.f32.mxu1 %v308_v18 }
  0x1f   :  { %257 = vmatmul.mubr.msk.f32.gmra.mxu0 %vm40_vm0, %v15_v23  ;;  %263 = vmatmul.mubr.msk.f32.gmra.mxu1 %vm40_vm0, %v21_v24 }
  0x20   :  { %165 = vmatprep.mubr.f32.mxu0 %v308_v18  ;;  %201 = vmatprep.mubr.f32.mxu1 %v308_v18 }
  0x23   :  { %258 = vmatmul.mubr.msk.f32.gmra.mxu0 %vm40_vm0, %v16_v25  ;;  %264 = vmatmul.mubr.msk.f32.gmra.mxu1 %vm40_vm0, %v22_v26 }
  0x24   :  { %171 = vmatprep.mubr.f32.mxu0 %v308_v18  ;;  %207 = vmatprep.mubr.f32.mxu1 %v308_v18 }
  0x27   :  { %259 = vmatmul.mubr.msk.f32.gmra.mxu0 %vm40_vm0, %v17_v27  ;;  %265 = vmatmul.mubr.msk.f32.gmra.mxu1 %vm40_vm0, %v23_v28 }
  0xd3   :  { %v143_v29 = vpop.f32.mrf.mxu0  ;;  %v179_v30 = vpop.f32.mrf.mxu1 }
  0xd4   :  { %214 = vst [vmem:[#allocation2] sm:$0xff] %v143_v29  ;;  %226 = vst [vmem:[#allocation2 + $0x60] sm:$0xff] %v179_v30 }
  0xd5   :  { %v145_v31 = vpop.f32.mrf.mxu0  ;;  %v181_v32 = vpop.f32.mrf.mxu1 }
  0xd6   :  { %215 = vst [vmem:[#allocation2 + $0x8] sm:$0xff] %v145_v31  ;;  %227 = vst [vmem:[#allocation2 + $0x68] sm:$0xff] %v181_v32 }
  0xd7   :  { %v149_v33 = vpop.f32.mrf.mxu0  ;;  %v185_v34 = vpop.f32.mrf.mxu1 }
  0xd8   :  { %216 = vst [vmem:[#allocation2 + $0x10] sm:$0xff] %v149_v33  ;;  %228 = vst [vmem:[#allocation2 + $0x70] sm:$0xff] %v185_v34 }
  0xd9   :  { %v151_v35 = vpop.f32.mrf.mxu0  ;;  %v187_v36 = vpop.f32.mrf.mxu1 }
  0xda   :  { %217 = vst [vmem:[#allocation2 + $0x18] sm:$0xff] %v151_v35  ;;  %229 = vst [vmem:[#allocation2 + $0x78] sm:$0xff] %v187_v36 }
  0xdb   :  { %v155_v37 = vpop.f32.mrf.mxu0  ;;  %v191_v38 = vpop.f32.mrf.mxu1 }
  0xdc   :  { %218 = vst [vmem:[#allocation2 + $0x20] sm:$0xff] %v155_v37  ;;  %230 = vst [vmem:[#allocation2 + $0x80] sm:$0xff] %v191_v38 }
  0xdd   :  { %v157_v39 = vpop.f32.mrf.mxu0  ;;  %v193_v40 = vpop.f32.mrf.mxu1 }
  0xde   :  { %219 = vst [vmem:[#allocation2 + $0x28] sm:$0xff] %v157_v39  ;;  %231 = vst [vmem:[#allocation2 + $0x88] sm:$0xff] %v193_v40 }
  0xdf   :  { %v161_v41 = vpop.f32.mrf.mxu0  ;;  %v197_v42 = vpop.f32.mrf.mxu1 }
  0xe0   :  { %220 = vst [vmem:[#allocation2 + $0x30] sm:$0xff] %v161_v41  ;;  %232 = vst [vmem:[#allocation2 + $0x90] sm:$0xff] %v197_v42 }
  0xe1   :  { %v163_v43 = vpop.f32.mrf.mxu0  ;;  %v199_v44 = vpop.f32.mrf.mxu1 }
  0xe2   :  { %221 = vst [vmem:[#allocation2 + $0x38] sm:$0xff] %v163_v43  ;;  %233 = vst [vmem:[#allocation2 + $0x98] sm:$0xff] %v199_v44 }
  0xe3   :  { %v167_v45 = vpop.f32.mrf.mxu0  ;;  %v203_v46 = vpop.f32.mrf.mxu1 }
  0xe4   :  { %222 = vst [vmem:[#allocation2 + $0x40] sm:$0xff] %v167_v45  ;;  %234 = vst [vmem:[#allocation2 + $0xa0] sm:$0xff] %v203_v46 }
  0xe5   :  { %v169_v47 = vpop.f32.mrf.mxu0  ;;  %v205_v48 = vpop.f32.mrf.mxu1 }
  0xe6   :  { %223 = vst [vmem:[#allocation2 + $0x48] sm:$0xff] %v169_v47  ;;  %235 = vst [vmem:[#allocation2 + $0xa8] sm:$0xff] %v205_v48 }
  0xe7   :  { %v173_v49 = vpop.f32.mrf.mxu0  ;;  %v209_v50 = vpop.f32.mrf.mxu1 }
  0xe8   :  { %224 = vst [vmem:[#allocation2 + $0x50] sm:$0xff] %v173_v49  ;;  %236 = vst [vmem:[#allocation2 + $0xb0] sm:$0xff] %v209_v50 }
  0xe9   :  { %v175_v51 = vpop.f32.mrf.mxu0  ;;  %v211_v52 = vpop.f32.mrf.mxu1 }
  0xea   :  { %225 = vst [vmem:[#allocation2 + $0x58] sm:$0xff] %v175_v51  ;;  %237 = vst [vmem:[#allocation2 + $0xb8] sm:$0xff] %v211_v52 }
  0xeb   :  { %297 = shalt.err (!%p294_p4)
}
  0xec   :  { %s310_s10 = smov 256   ;;  %s311_s11 = smov 16  }
  0xed   :  { %249 = dma.vmem_to_hbm [thread:$0]  %s244_s8, 3072, %s428_s2, [#allocation3], %s310_s10, %s310_s10, %s311_s11  }
  0xee   :  { %306 = dma.done.wait [#allocation3], 3072  }
  0xef   :  { %307 = vsyncadd [#allocation3], 4294964224 }
  0xf0   :  { %253 = vsyncpa [#allocation3], 1 }

</bundles_post_ra>
